<compile_context>
chip_gen: v7x
topology: tpu7x:2x2x1
jax: 0.10.0
libtpu: 0.0.40
codegen_flags: <defaults>
</compile_context>

<pallas_src>
import functools

import jax
import jax.numpy as jnp
from jax.experimental import pallas as pl
from jax.experimental.pallas import tpu as pltpu


def _poly_linear_kernel(x_ref, w_ref, b_ref, o_ref, *, degrees):
    # x_ref : (TB, D)        VMEM  (batch tile)
    # w_ref : (n_deg, 1, D)  VMEM  (per-degree weight rows, untransposed)
    # b_ref : (1, 1)         SMEM  (scalar bias)
    # o_ref : (TB, 1)        VMEM
    x = x_ref[...].astype(jnp.float32)

    # Build the required powers of x incrementally (one VPU mul per step)
    # instead of recomputing x**d from scratch per degree.
    deg_list = list(degrees)
    pow_cache = {}
    if 0 in deg_list:
        pow_cache[0] = jnp.ones_like(x)
    pos = sorted({d for d in deg_list if isinstance(d, int) and d >= 1})
    if pos:
        p = x
        for k in range(1, pos[-1] + 1):
            if k in pos:
                pow_cache[k] = p
            if k < pos[-1]:
                p = p * x

    # VPU multiply-accumulate: acc(TB, D) += x^d * w_d   (broadcast (1, D) row)
    acc = None
    for i, d in enumerate(deg_list):
        term = pow_cache.get(d)
        if term is None:
            term = x ** d  # fallback for negative / non-integer degrees
        contrib = term * w_ref[i].astype(jnp.float32)   # (TB, D) * (1, D)
        acc = contrib if acc is None else acc + contrib

    # Single cross-lane reduce (XLU) + scalar bias; no MXU involved.
    out = jnp.sum(acc, axis=-1, keepdims=True) + b_ref[0, 0]
    o_ref[...] = out.astype(o_ref.dtype)


def polynomial_model_forward(x, weight, bias, degrees_list, *, block_b=1024):
    """x: (B, x_dim) f32, weight: (1, len(degrees)*x_dim) f32, bias: () f32."""
    B, D = x.shape
    n_deg = len(degrees_list)
    assert weight.shape == (1, n_deg * D)

    # nn.Linear weight layout is (1, n_deg*D) where chunk i (size D) multiplies
    # x**degrees_list[i].  Reshape (free, row-major) to per-degree rows
    # (n_deg, 1, D) so the kernel never transposes or concatenates.
    w_rows = weight.reshape(n_deg, 1, D)

    # Batch tiling: one tile if small, else TB-row tiles (TB multiple of 8),
    # padding the batch so the grid covers full tiles (padded rows sliced off).
    if B <= block_b:
        tb = B
        x_in = x
    else:
        tb = block_b
        b_pad = pl.cdiv(B, tb) * tb
        x_in = jnp.pad(x, ((0, b_pad - B), (0, 0))) if b_pad != B else x
    bp = x_in.shape[0]
    grid = (bp // tb,)

    kernel = functools.partial(_poly_linear_kernel, degrees=tuple(degrees_list))

    out = pl.pallas_call(
        kernel,
        out_shape=jax.ShapeDtypeStruct((bp, 1), jnp.float32),
        grid_spec=pltpu.PrefetchScalarGridSpec(
            num_scalar_prefetch=0,
            grid=grid,
            in_specs=[
                pl.BlockSpec((tb, D), lambda i: (i, 0)),            # x tile
                pl.BlockSpec((n_deg, 1, D), lambda i: (0, 0, 0)),   # weights (resident)
                pl.BlockSpec(memory_space=pltpu.SMEM),              # bias scalar
            ],
            out_specs=pl.BlockSpec((tb, 1), lambda i: (i, 0)),
        ),
        compiler_params=pltpu.CompilerParams(
            dimension_semantics=("parallel",),
        ),
    )(x_in, w_rows, bias.reshape(1, 1))

    return out[:B]


if __name__ == "__main__":
    # Small shapes consistent with the module.
    batch = 8
    x_dim = 32
    degrees_list = [1, 2, 3]

    key = jax.random.PRNGKey(0)
    kx, kw, kb = jax.random.split(key, 3)

    x = jax.random.normal(kx, (batch, x_dim), dtype=jnp.float32)

    # Deterministic parameter init (nn.Linear(len(degrees)*x_dim, 1)):
    fan_in = len(degrees_list) * x_dim
    bound = 1.0 / (fan_in ** 0.5)
    weight = jax.random.uniform(kw, (1, fan_in), dtype=jnp.float32,
                                minval=-bound, maxval=bound)
    bias = jax.random.uniform(kb, (), dtype=jnp.float32,
                              minval=-bound, maxval=bound)

    out = polynomial_model_forward(x, weight, bias, degrees_list)
    out = jax.block_until_ready(out)

    # Pure-JAX reference check (matches the PyTorch module exactly).
    feats_ref = jnp.concatenate([x ** d for d in degrees_list], axis=1)
    ref = feats_ref @ weight.T + bias
    assert out.shape == (batch, 1)
    assert jnp.allclose(out, ref, atol=1e-4, rtol=1e-4)

    print("KERNEL_OK")
</pallas_src>

<mosaic_0001>
module attributes {stable_mosaic.version = 11 : i64} {
  func.func @_poly_linear_kernel(%arg0: i32, %arg1: memref<8x32xf32, #tpu.memory_space<vmem>>, %arg2: memref<3x1x32xf32, #tpu.memory_space<vmem>>, %arg3: memref<1x1xf32, #tpu.memory_space<smem>>, %arg4: memref<8x1xf32, #tpu.memory_space<vmem>>) attributes {dimension_semantics = [#tpu.dimension_semantics<parallel>], iteration_bounds = array<i64: 1>, scalar_prefetch = 0 : i64, scratch_operands = 0 : i64, tpu.core_type = #tpu.core_type<tc>, window_params = [{transform_indices = @transform_0, window_bounds = array<i64: 8, 32>}, {pipeline_mode = #tpu.pipeline_mode<synchronous>, transform_indices = @transform_1, window_bounds = array<i64: 3, 1, 32>}, {transform_indices = @transform_2, window_bounds = array<i64: 1, 1>}, {transform_indices = @transform_3, window_bounds = array<i64: 8, 1>}]} {
    %c0 = arith.constant 0 : index
    %c0_0 = arith.constant 0 : index
    %0 = vector.load %arg1[%c0, %c0_0] : memref<8x32xf32, #tpu.memory_space<vmem>>, vector<8x32xf32>
    %1 = arith.mulf %0, %0 : vector<8x32xf32>
    %2 = arith.mulf %1, %0 : vector<8x32xf32>
    %c0_1 = arith.constant 0 : index
    %c0_2 = arith.constant 0 : index
    %c0_3 = arith.constant 0 : index
    %3 = vector.load %arg2[%c0_1, %c0_2, %c0_3] : memref<3x1x32xf32, #tpu.memory_space<vmem>>, vector<1x1x32xf32>
    %4 = vector.shape_cast %3 : vector<1x1x32xf32> to vector<1x32xf32>
    %5 = vector.broadcast %4 : vector<1x32xf32> to vector<8x32xf32>
    %6 = arith.mulf %0, %5 : vector<8x32xf32>
    %c1 = arith.constant 1 : index
    %c0_4 = arith.constant 0 : index
    %c0_5 = arith.constant 0 : index
    %7 = vector.load %arg2[%c1, %c0_4, %c0_5] : memref<3x1x32xf32, #tpu.memory_space<vmem>>, vector<1x1x32xf32>
    %8 = vector.shape_cast %7 : vector<1x1x32xf32> to vector<1x32xf32>
    %9 = vector.broadcast %8 : vector<1x32xf32> to vector<8x32xf32>
    %10 = arith.mulf %1, %9 : vector<8x32xf32>
    %11 = arith.addf %6, %10 : vector<8x32xf32>
    %c2 = arith.constant 2 : index
    %c0_6 = arith.constant 0 : index
    %c0_7 = arith.constant 0 : index
    %12 = vector.load %arg2[%c2, %c0_6, %c0_7] : memref<3x1x32xf32, #tpu.memory_space<vmem>>, vector<1x1x32xf32>
    %13 = vector.shape_cast %12 : vector<1x1x32xf32> to vector<1x32xf32>
    %14 = vector.broadcast %13 : vector<1x32xf32> to vector<8x32xf32>
    %15 = arith.mulf %2, %14 : vector<8x32xf32>
    %16 = arith.addf %11, %15 : vector<8x32xf32>
    %cst = arith.constant dense<0.000000e+00> : vector<8xf32>
    %17 = vector.multi_reduction <add>, %16, %cst [1] : vector<8x32xf32> to vector<8xf32>
    %18 = vector.shape_cast %17 : vector<8xf32> to vector<8x1xf32>
    %c0_8 = arith.constant 0 : index
    %c0_9 = arith.constant 0 : index
    %19 = memref.load %arg3[%c0_8, %c0_9] : memref<1x1xf32, #tpu.memory_space<smem>>
    %20 = vector.broadcast %19 : f32 to vector<8x1xf32>
    %21 = arith.addf %18, %20 : vector<8x1xf32>
    %c0_10 = arith.constant 0 : index
    %c0_11 = arith.constant 0 : index
    %22 = vector.load %arg4[%c0_10, %c0_11] : memref<8x1xf32, #tpu.memory_space<vmem>>, vector<8x1xf32>
    tpu.vector_store %arg4[%c0_10, %c0_11], %21 {strides = array<i32>} : memref<8x1xf32, #tpu.memory_space<vmem>>, vector<8x1xf32>,
    return
  }
  func.func @transform_0(%arg0: i32) -> (i32, i32) {
    %c0_i32 = arith.constant 0 : i32
    %c0_i32_0 = arith.constant 0 : i32
    return %arg0, %c0_i32 : i32, i32
  }
  func.func @transform_1(%arg0: i32) -> (i32, i32, i32) {
    %c0_i32 = arith.constant 0 : i32
    %c0_i32_0 = arith.constant 0 : i32
    %c0_i32_1 = arith.constant 0 : i32
    %c0_i32_2 = arith.constant 0 : i32
    return %c0_i32, %c0_i32_0, %c0_i32_1 : i32, i32, i32
  }
  func.func @transform_2(%arg0: i32) -> (i32, i32) {
    %c0_i32 = arith.constant 0 : i32
    %c0_i32_0 = arith.constant 0 : i32
    %c0_i32_1 = arith.constant 0 : i32
    return %c0_i32, %c0_i32_0 : i32, i32
  }
  func.func @transform_3(%arg0: i32) -> (i32, i32) {
    %c0_i32 = arith.constant 0 : i32
    %c0_i32_0 = arith.constant 0 : i32
    return %arg0, %c0_i32 : i32, i32
  }
}

</mosaic_0001>

<bundles_post_ra>
// kernel: tpu_custom_call.1
= control target key start
LH: loop header
LB: loop body
LE: loop exit
PB: predicated region body
PF: predicated region fallthrough
CT: control target
= control target key end

     0   :  { %9 = vsyncpa [#allocation4], 0  ;;  %s102_s12 = smov [#allocation3]   ;;  %s150_s0 = inlined_call_operand.hbm [shape: f32[8,32], index: 0, kind: input, shape index: {}]   ;;  %s151_s1 = inlined_call_operand.vmem [shape: f32[3,1,32], index: 1, kind: input, shape index: {}]   ;;  %s152_s2 = inlined_call_operand.<no memory space> [shape: f32[1,1], index: 2, kind: input, shape index: {}]   ;;  %s153_s3 = inlined_call_operand.vmem [shape: f32[8,1], index: 3, kind: output, shape index: {}]  }
   0x1   :  { %s16_s13 = sshll.u32 %s102_s12, 4  ;;  %s78_s16 = scalar_lea.hbm %s150_s0, 128  ;;  %s17_s13 = int_to_ptr.vmem [resolvable:$true] %s16_s13 }
   0x2   :  { %p79_p0 = scmp.ne.s32.totalorder %s150_s0, %s78_s16  ;;  %p82_p1 = scmp.lt.u32.totalorder %s78_s16, %s150_s0 }
   0x4   :  { %p84_p2 = pnand %p82_p1, %p79_p0 }
   0x6   :  { %87 = shalt.err (!%p84_p2)
}
   0x7   :  { %s88_s21 = scalar_lea.vmem %s17_s13, 128  ;;  %p93_p4 = scmp.lt.s32.totalorder %s17_s13, %s17_s13 }
   0x8   :  { %p89_p3 = scmp.ne.s32.totalorder %s17_s13, %s88_s21  ;;  %p94_p5 = scmp.lt.s32.totalorder %s88_s21, %s88_s21 }
   0xa   :  { %p95_p6 = por %p94_p5, %p93_p4 }
   0xc   :  { %p96_p7 = pnand %p95_p6, %p89_p3 }
   0xe   :  { %99 = shalt.err (!%p96_p7)
}
   0xf   :  { %19 = dma.hbm_to_vmem [thread:$0]  %s150_s0, 128, %s17_s13, [#allocation4]  }
  0x10   :  { %100 = dma.done.wait [#allocation4], 128  }
  0x11   :  { %101 = vsyncadd [#allocation4], 4294967168  ;;  %v27_v0 = vld [vmem:[#allocation3] sm:$0xff]  ;;  %vm58_vm0 = vcmask 261120   ;;  %v63_v12 = vstv %s152_s2  ;;  %vm65_vm1 = vcmask 7168  }
  0x12   :  { %v72_v1 = vld [vmem:[%s151_s1] ss:$0 sm:$0xff]  ;;  %v74_v2 = vld [vmem:[%s151_s1 + $0x1] ss:$0 sm:$0xff]  ;;  %v28_v3 = vmul.f32 %v27_v0, %v27_v0  ;;  %v76_v5 = vld [vmem:[%s151_s1 + $0x2] ss:$0 sm:$0xff] }
  0x13   :  { %v37_v4 = vmul.f32 %v72_v1, %v27_v0 }
  0x14   :  { %v29_v6 = vmul.f32 %v28_v3, %v27_v0  ;;  %v46_v7 = vmul.f32 %v74_v2, %v28_v3 }
  0x16   :  { %v47_v8 = vadd.f32 %v46_v7, %v37_v4  ;;  %v56_v9 = vmul.f32 %v76_v5, %v29_v6 }
  0x18   :  { %v57_v10 = vadd.f32 %v56_v9, %v47_v8 }
  0x1a   :  { %v59_v11 = vsel %vm58_vm0, %v57_v10, 0.0 }
  0x1b   :  { %60 = vadd.xlane.f32.xlu0 %v59_v11 }
  0xa8   :  { %v61_v13 = vpop.xlane.xlu0 %60 }
  0xa9   :  { %v64_v14 = vadd.f32 %v63_v12, %v61_v13 }
  0xab   :  { %66 = vst.msk [vmem:[%s153_s3] sm:$0xff] %vm65_vm1, %v64_v14 }
  0xac   :  { %71 = vsyncpa [#allocation4], 1 }

</bundles_post_ra>
